<compile_context>
chip_gen: v7x
topology: tpu7x:2x2x1
jax: 0.10.0
libtpu: 0.0.40
codegen_flags: <defaults>
</compile_context>

<pallas_src>
import functools

import jax
import jax.numpy as jnp
from jax.experimental import pallas as pl
from jax.experimental.pallas import tpu as pltpu


def _round_up(x, m):
    return (x + m - 1) // m * m


def _upsample_kernel(x_ref, mask_ref, w_ref, b_ref, o_ref, *, Nb, Wp, Sp):
    """Nb images per grid step, one fused MXU matmul.

    x_ref   : (Nb, Cp, LpP)     bf16  edge-padded images, spatial flattened, Cp=pad8(Cin)
    mask_ref: (9*Cp, Sp)        bf16  0/1 zero-boundary masks, pre-expanded over channels
    w_ref   : (4*Cout, 18*Cp)   bf16  fused weights: [CT(masked taps) | bilinear*1x1(raw)]
    b_ref   : (4*Cout, 1)       f32   per-output-row bias ([bt ; b1] repeated per phase)
    o_ref   : (Nb, 4*Cout, Sp)  bf16  per-phase output planes
    """
    mask = mask_ref[...]                                   # (9*Cp, Sp)
    w = w_ref[...]                                         # (4*Cout, 18*Cp)
    bias = b_ref[...]                                      # (4*Cout, 1) f32

    cols = []
    for b in range(Nb):
        xb = x_ref[b]                                      # (Cp, LpP)
        # 9 shifted tap views tap(a,c)[ch, m*Wp+l] = edge_padded_x[ch, m+a, l+c],
        # stacked along the (sublane-aligned) channel axis.
        taps = jnp.concatenate(
            [xb[:, a * Wp + c: a * Wp + c + Sp] for a in range(3) for c in range(3)],
            axis=0)                                        # (9*Cp, Sp)
        # Top half: zero-boundary (masked) taps for the ConvTranspose rows of the fused
        # weight; bottom half: edge-clamped taps for the bilinear+1x1 rows.
        cols.append(jnp.concatenate([taps * mask, taps], axis=0))   # (18*Cp, Sp)

    stacked = cols[0] if Nb == 1 else jnp.concatenate(cols, axis=1)  # (18*Cp, Nb*Sp)

    acc = jnp.dot(w, stacked, preferred_element_type=jnp.float32)    # (4*Cout, Nb*Sp)
    out = (acc + bias).astype(o_ref.dtype)

    for b in range(Nb):                                    # dense, lane-aligned stores
        o_ref[b] = out[:, b * Sp:(b + 1) * Sp]


def _pick_images_per_step(N, per_image_bytes, budget_bytes=8 * 1024 * 1024):
    """Largest divisor of N fitting the VMEM budget while keeping grid length >= 2."""
    cap = max(1, budget_bytes // max(per_image_bytes, 1))
    best = 1
    for d in range(1, N + 1):
        if N % d != 0 or d > cap:
            continue
        if N >= 2 and N // d < 2:   # keep >= 2 parallel steps for v7x's two TensorCores
            continue
        best = max(best, d)
    return best


def upsample_forward(x, Wt, bt, W1, b1, *, images_per_step=None):
    """Upsample forward pass.

    x  : [N, Cin, H, W]  (NCHW, PyTorch convention)
    Wt : ConvTranspose2d weight [Cin, C1, 4, 4],  bt: [C1]
    W1 : 1x1 Conv2d weight [C2, Cin, 1, 1],       b1: [C2]
    returns [N, C1+C2, 2H, 2W] (NCHW, bfloat16)
    """
    N, Cin, H, W = x.shape
    C1 = Wt.shape[1]
    C2 = W1.shape[0]
    Cout = C1 + C2
    Hp, Wp = H + 2, W + 2
    Lp = Hp * Wp
    S = H * Wp                      # flattened positions per phase (2 junk cols per row)
    Sp = _round_up(S, 128)          # lane-dense output rows (multiple of 128)
    Cp = _round_up(Cin, 8)          # sublane-aligned channel count
    LpP = _round_up(2 * Wp + 2 + Sp, 128)   # padded flat image length (covers max tap)

    # Edge-pad once (bilinear clamp semantics); the transposed conv's zero boundary is
    # restored in-kernel with masks. Channels zero-padded to Cp; spatial flattened so
    # positions live in the lane dim.
    xpad = jnp.pad(x, ((0, 0), (0, 0), (1, 1), (1, 1)), mode="edge").astype(jnp.bfloat16)
    xpad = jnp.pad(xpad, ((0, 0), (0, Cp - Cin), (0, 0), (0, 0)))
    x_flat = jnp.pad(xpad.reshape(N, Cp, Lp), ((0, 0), (0, 0), (0, LpP - Lp)))

    # Boundary masks: tap (a,c) reads x[m+a-1, l+c-1]; the transposed conv needs 0
    # whenever that index is out of bounds. Expanded over the Cp channel slots so the
    # kernel does a single aligned elementwise multiply (held resident across the grid).
    m_idx = jnp.arange(H)[:, None]
    l_idx = jnp.arange(Wp)[None, :]
    rows = []
    for a in range(3):
        for c in range(3):
            oob = ((m_idx == 0) & (a == 0)) | ((m_idx == H - 1) & (a == 2)) | \
                  ((l_idx == 0) & (c == 0)) | ((l_idx == W - 1) & (c == 2))
            rows.append(jnp.where(oob, 0.0, 1.0).reshape(S))
    mask = jnp.pad(jnp.stack(rows, axis=0), ((0, 0), (0, Sp - S)))          # (9, Sp)
    mask_big = jnp.repeat(mask, Cp, axis=0).astype(jnp.bfloat16)            # (9*Cp, Sp)

    # Fused weight (4*Cout, 18*Cp). Row block p*Cout+c (phase p = 2*py+px).
    # Columns [t9*Cp : (t9+1)*Cp] consume masked tap t9=3a+c (ConvTranspose, zero
    # boundary); columns [(9+t9)*Cp : ...] consume unmasked taps (bilinear edge clamp),
    # with the wy*wx bilinear coefficients folded into the 1x1 weights.
    w1_mat = W1[:, :, 0, 0]                                                 # (C2, Cin)
    Wf = jnp.zeros((4, Cout, 18, Cp), jnp.float32)
    phases = ((0, 0), (0, 1), (1, 0), (1, 1))
    for p, (py, px) in enumerate(phases):
        for ty in range(2):
            for tx in range(2):
                t9 = 3 * (py + ty) + (px + tx)
                w_ct = jnp.transpose(Wt[:, :, 3 - py - 2 * ty, 3 - px - 2 * tx])  # (C1,Cin)
                Wf = Wf.at[p, :C1, t9, :Cin].set(w_ct)
                cy = 0.25 if ty == py else 0.75
                cx = 0.25 if tx == px else 0.75
                Wf = Wf.at[p, C1:, 9 + t9, :Cin].set(cy * cx * w1_mat)
    Wf = Wf.reshape(4 * Cout, 18 * Cp).astype(jnp.bfloat16)

    bias = jnp.tile(jnp.concatenate([bt, b1]), 4).astype(jnp.float32).reshape(4 * Cout, 1)

    # Images per grid step (amortize per-step overhead; keep grid >= 2 and even-ish).
    per_image_bytes = (Cp * LpP + 4 * Cout * Sp) * 2 + 18 * Cp * Sp * 2 * 2 \
        + 4 * Cout * Sp * 4
    Nb = images_per_step if images_per_step is not None else \
        _pick_images_per_step(N, per_image_bytes)
    assert N % Nb == 0, (N, Nb)

    kernel = functools.partial(_upsample_kernel, Nb=Nb, Wp=Wp, Sp=Sp)

    out_flat = pl.pallas_call(
        kernel,
        out_shape=jax.ShapeDtypeStruct((N, 4 * Cout, Sp), jnp.bfloat16),
        grid=(N // Nb,),
        in_specs=[
            pl.BlockSpec((Nb, Cp, LpP), lambda n: (n, 0, 0)),
            pl.BlockSpec((9 * Cp, Sp), lambda n: (0, 0)),
            pl.BlockSpec((4 * Cout, 18 * Cp), lambda n: (0, 0)),
            pl.BlockSpec((4 * Cout, 1), lambda n: (0, 0)),
        ],
        out_specs=pl.BlockSpec((Nb, 4 * Cout, Sp), lambda n: (n, 0, 0)),
        compiler_params=pltpu.CompilerParams(
            dimension_semantics=("parallel",),
            vmem_limit_bytes=32 * 1024 * 1024,
        ),
    )(x_flat, mask_big, Wf, bias)

    # Phase-planar -> NCHW interleave (done on bf16, half the bytes of the old f32 pass).
    # TODO(synk): consumers that accept (N, 2, 2, Cout, H, W) phase-planar layout can
    #   skip this transpose entirely.
    out = out_flat[:, :, :S].reshape(N, 2, 2, Cout, H, Wp)[..., :W]
    out = jnp.transpose(out, (0, 3, 4, 1, 5, 2)).reshape(N, Cout, 2 * H, 2 * W)
    return out


# ---------------- pure-JAX reference (for correctness check only) ----------------

def _bilinear_up2_ref(x):
    N, C, H, W = x.shape

    def idx_w(size):
        o = jnp.arange(2 * size)
        src = jnp.clip((o + 0.5) / 2.0 - 0.5, 0.0, None)
        i0 = jnp.floor(src).astype(jnp.int32)
        lam = src - i0
        i1 = jnp.minimum(i0 + 1, size - 1)
        return i0, i1, lam

    y0, y1, ly = idx_w(H)
    x0, x1, lx = idx_w(W)
    g00 = x[:, :, y0][:, :, :, x0]
    g01 = x[:, :, y0][:, :, :, x1]
    g10 = x[:, :, y1][:, :, :, x0]
    g11 = x[:, :, y1][:, :, :, x1]
    wy0 = (1.0 - ly)[:, None]
    wy1 = ly[:, None]
    wx0 = (1.0 - lx)[None, :]
    wx1 = lx[None, :]
    return wy0 * wx0 * g00 + wy0 * wx1 * g01 + wy1 * wx0 * g10 + wy1 * wx1 * g11


def upsample_forward_ref(x, Wt, bt, W1, b1):
    k, s, p = 4, 2, 1
    w_conv = jnp.transpose(jnp.flip(Wt, axis=(2, 3)), (1, 0, 2, 3))  # [C1, Cin, 4, 4]
    y_ct = jax.lax.conv_general_dilated(
        x, w_conv, window_strides=(1, 1),
        padding=[(k - 1 - p, k - 1 - p)] * 2,
        lhs_dilation=(s, s),
        dimension_numbers=("NCHW", "OIHW", "NCHW")) + bt[None, :, None, None]
    up = _bilinear_up2_ref(x)
    y_up = jnp.einsum("nchw,oc->nohw", up, W1[:, :, 0, 0]) + b1[None, :, None, None]
    return jnp.concatenate([y_ct, y_up], axis=1)


if __name__ == "__main__":
    key = jax.random.PRNGKey(0)
    kx, kw, kb, kw1, kb1 = jax.random.split(key, 5)

    N, Cin, H, W = 2, 4, 16, 16          # small NCHW input
    Cout = Cin                            # out_channels defaults to in_channels
    C1 = Cout // 2                        # ConvTranspose2d output channels
    C2 = Cout // 2                        # 1x1-conv output channels

    x = jax.random.normal(kx, (N, Cin, H, W), jnp.float32)
    Wt = jax.random.normal(kw, (Cin, C1, 4, 4), jnp.float32) * 0.1   # ConvTranspose2d weight
    bt = jax.random.normal(kb, (C1,), jnp.float32) * 0.1
    W1 = jax.random.normal(kw1, (C2, Cin, 1, 1), jnp.float32) * 0.1  # Conv2d 1x1 weight
    b1 = jax.random.normal(kb1, (C2,), jnp.float32) * 0.1

    out = jax.block_until_ready(upsample_forward(x, Wt, bt, W1, b1))
    ref = upsample_forward_ref(x, Wt, bt, W1, b1)

    assert out.shape == (N, Cout, 2 * H, 2 * W), out.shape
    out32 = out.astype(jnp.float32)
    max_err = float(jnp.max(jnp.abs(out32 - ref)))
    # bf16 operands + bf16 output (f32 accumulation) -> relaxed tolerance (intentional).
    assert jnp.allclose(out32, ref, atol=4e-2, rtol=4e-2), max_err
    print("KERNEL_OK")
</pallas_src>

<mosaic_0001>
module attributes {stable_mosaic.version = 11 : i64} {
  func.func @_upsample_kernel(%arg0: i32, %arg1: memref<1x8x512xbf16, #tpu.memory_space<vmem>>, %arg2: memref<72x384xbf16, #tpu.memory_space<vmem>>, %arg3: memref<16x144xbf16, #tpu.memory_space<vmem>>, %arg4: memref<16x1xf32, #tpu.memory_space<vmem>>, %arg5: memref<1x16x384xbf16, #tpu.memory_space<vmem>>) attributes {dimension_semantics = [#tpu.dimension_semantics<parallel>], iteration_bounds = array<i64: 2>, scalar_prefetch = 0 : i64, scratch_operands = 0 : i64, tpu.core_type = #tpu.core_type<tc>, window_params = [{transform_indices = @transform_0, window_bounds = array<i64: 1, 8, 512>}, {pipeline_mode = #tpu.pipeline_mode<synchronous>, transform_indices = @transform_1, window_bounds = array<i64: 72, 384>}, {pipeline_mode = #tpu.pipeline_mode<synchronous>, transform_indices = @transform_2, window_bounds = array<i64: 16, 144>}, {pipeline_mode = #tpu.pipeline_mode<synchronous>, transform_indices = @transform_3, window_bounds = array<i64: 16, 1>}, {transform_indices = @transform_4, window_bounds = array<i64: 1, 16, 384>}]} {
    %c0 = arith.constant 0 : index
    %c0_0 = arith.constant 0 : index
    %0 = vector.load %arg2[%c0, %c0_0] : memref<72x384xbf16, #tpu.memory_space<vmem>>, vector<72x384xbf16>
    %c0_1 = arith.constant 0 : index
    %c0_2 = arith.constant 0 : index
    %1 = vector.load %arg3[%c0_1, %c0_2] : memref<16x144xbf16, #tpu.memory_space<vmem>>, vector<16x144xbf16>
    %c0_3 = arith.constant 0 : index
    %c0_4 = arith.constant 0 : index
    %2 = vector.load %arg4[%c0_3, %c0_4] : memref<16x1xf32, #tpu.memory_space<vmem>>, vector<16x1xf32>
    %c0_5 = arith.constant 0 : index
    %c0_6 = arith.constant 0 : index
    %c0_7 = arith.constant 0 : index
    %3 = vector.load %arg1[%c0_5, %c0_6, %c0_7] : memref<1x8x512xbf16, #tpu.memory_space<vmem>>, vector<1x8x512xbf16>
    %4 = vector.shape_cast %3 : vector<1x8x512xbf16> to vector<8x512xbf16>
    %5 = vector.extract_strided_slice %4 {offsets = [0, 0], sizes = [8, 384], strides = [1, 1]} : vector<8x512xbf16> to vector<8x384xbf16>
    %6 = vector.extract_strided_slice %4 {offsets = [0, 1], sizes = [8, 384], strides = [1, 1]} : vector<8x512xbf16> to vector<8x384xbf16>
    %7 = vector.extract_strided_slice %4 {offsets = [0, 2], sizes = [8, 384], strides = [1, 1]} : vector<8x512xbf16> to vector<8x384xbf16>
    %8 = vector.extract_strided_slice %4 {offsets = [0, 18], sizes = [8, 384], strides = [1, 1]} : vector<8x512xbf16> to vector<8x384xbf16>
    %9 = vector.extract_strided_slice %4 {offsets = [0, 19], sizes = [8, 384], strides = [1, 1]} : vector<8x512xbf16> to vector<8x384xbf16>
    %10 = vector.extract_strided_slice %4 {offsets = [0, 20], sizes = [8, 384], strides = [1, 1]} : vector<8x512xbf16> to vector<8x384xbf16>
    %11 = vector.extract_strided_slice %4 {offsets = [0, 36], sizes = [8, 384], strides = [1, 1]} : vector<8x512xbf16> to vector<8x384xbf16>
    %12 = vector.extract_strided_slice %4 {offsets = [0, 37], sizes = [8, 384], strides = [1, 1]} : vector<8x512xbf16> to vector<8x384xbf16>
    %13 = vector.extract_strided_slice %4 {offsets = [0, 38], sizes = [8, 384], strides = [1, 1]} : vector<8x512xbf16> to vector<8x384xbf16>
    %14 = tpu.concatenate %5, %6, %7, %8, %9, %10, %11, %12, %13 in 0 : vector<8x384xbf16>, vector<8x384xbf16>, vector<8x384xbf16>, vector<8x384xbf16>, vector<8x384xbf16>, vector<8x384xbf16>, vector<8x384xbf16>, vector<8x384xbf16>, vector<8x384xbf16> -> vector<72x384xbf16>
    %15 = arith.mulf %14, %0 : vector<72x384xbf16>
    %16 = tpu.concatenate %15, %14 in 0 : vector<72x384xbf16>, vector<72x384xbf16> -> vector<144x384xbf16>
    %cst = arith.constant dense<0.000000e+00> : vector<16x384xf32>
    %17 = tpu.matmul %1, %16, %cst {dimension_numbers = #tpu.dot_dimension_numbers<[1], [0], [0], [1], [0, 0, 1, 1], [], []>} : vector<16x144xbf16>, vector<144x384xbf16>, vector<16x384xf32> -> vector<16x384xf32>
    %18 = vector.broadcast %2 : vector<16x1xf32> to vector<16x384xf32>
    %19 = arith.addf %17, %18 : vector<16x384xf32>
    %20 = arith.truncf %19 : vector<16x384xf32> to vector<16x384xbf16>
    %c0_8 = arith.constant 0 : index
    %c0_9 = arith.constant 0 : index
    %c0_10 = arith.constant 0 : index
    %21 = vector.load %arg5[%c0_8, %c0_9, %c0_10] : memref<1x16x384xbf16, #tpu.memory_space<vmem>>, vector<1x16x384xbf16>
    %22 = vector.shape_cast %21 : vector<1x16x384xbf16> to vector<16x384xbf16>
    %23 = vector.shape_cast %20 : vector<16x384xbf16> to vector<1x16x384xbf16>
    tpu.vector_store %arg5[%c0_8, %c0_9, %c0_10], %23 {strides = array<i32>} : memref<1x16x384xbf16, #tpu.memory_space<vmem>>, vector<1x16x384xbf16>,
    return
  }
  func.func @transform_0(%arg0: i32) -> (i32, i32, i32) {
    %c0_i32 = arith.constant 0 : i32
    %c0_i32_0 = arith.constant 0 : i32
    %c0_i32_1 = arith.constant 0 : i32
    return %arg0, %c0_i32, %c0_i32_0 : i32, i32, i32
  }
  func.func @transform_1(%arg0: i32) -> (i32, i32) {
    %c0_i32 = arith.constant 0 : i32
    %c0_i32_0 = arith.constant 0 : i32
    %c0_i32_1 = arith.constant 0 : i32
    return %c0_i32, %c0_i32_0 : i32, i32
  }
  func.func @transform_2(%arg0: i32) -> (i32, i32) {
    %c0_i32 = arith.constant 0 : i32
    %c0_i32_0 = arith.constant 0 : i32
    %c0_i32_1 = arith.constant 0 : i32
    return %c0_i32, %c0_i32_0 : i32, i32
  }
  func.func @transform_3(%arg0: i32) -> (i32, i32) {
    %c0_i32 = arith.constant 0 : i32
    %c0_i32_0 = arith.constant 0 : i32
    %c0_i32_1 = arith.constant 0 : i32
    return %c0_i32, %c0_i32_0 : i32, i32
  }
  func.func @transform_4(%arg0: i32) -> (i32, i32, i32) {
    %c0_i32 = arith.constant 0 : i32
    %c0_i32_0 = arith.constant 0 : i32
    %c0_i32_1 = arith.constant 0 : i32
    return %arg0, %c0_i32, %c0_i32_0 : i32, i32, i32
  }
}

</mosaic_0001>

<bundles_post_ra>
// kernel: tpu_custom_call.1
= control target key start
LH: loop header
LB: loop body
LE: loop exit
PB: predicated region body
PF: predicated region fallthrough
CT: control target
= control target key end

     0   :  { %9 = vsyncpa [#allocation3], 0  ;;  %s1450_s0 = inlined_call_operand.hbm [shape: bf16[2,8,512], index: 0, kind: input, shape index: {}]   ;;  %s1451_s1 = inlined_call_operand.hbm [shape: bf16[72,384], index: 1, kind: input, shape index: {}]   ;;  %s1452_s2 = inlined_call_operand.vmem [shape: bf16[16,144], index: 2, kind: input, shape index: {}]   ;;  %s1453_s3 = inlined_call_operand.vmem [shape: f32[16,1], index: 3, kind: input, shape index: {}]   ;;  %s1454_s4 = inlined_call_operand.hbm [shape: bf16[2,16,384], index: 4, kind: output, shape index: {}]  }
   0x1   :  { %11 = vsyncpa [#allocation3 + $0x1], 0 }
   0x2   :  { %12 = vsyncpa [#allocation6], 0 }
   0x3   :  { %13 = vsyncpa [#allocation4], 0 }
   0x4   :  { %15 = vsyncpa [#allocation4 + $0x1], 0  ;;  %s1110_s15 = smov 0   ;;  %s1112_s16 = smov 0  }
   0x5   :  { %s1114_s17 = smov 0   ;;  %s1116_s18 = smov 0  }
   0x6 LB: > { %s1131_s19 = sadd.s32 4294967295, %s1067_s18   ;;  %s794_s20 = sadd.s32 4294967294, %s1067_s18   ;;  %s1067_s18 = sphi %s1116_s18, %s1474_s18   ;;  %s1063_s17 = sphi %s1114_s17, %s1473_s17   ;;  %s1059_s16 = sphi %s1112_s16, %s1472_s16   ;;  %s1055_s15 = sphi %s1110_s15, %s1471_s15  }
   0x7   : > { %p41_p0 = scmp.ne.s32.totalorder %s1059_s16, %s1055_s15  ;;  %p1455_p1 = scmp.eq.s32.totalorder %s1131_s19, 0 }
   0x8   : > { %p134_p3 = scmp.eq.s32.totalorder %s794_s20, 1  ;;  %p795_p5 = scmp.ge.s32.totalorder %s1067_s18, 1 }
   0x9   : > { %p1140_p4 = por %p1455_p1, %p41_p0  ;;  %p141_p7 = scmp.lt.s32.totalorder %s1067_s18, 3 }
   0xa   : > { %p1145_p6 = por %p134_p3, %p41_p0  ;;  %s1069_s24 = smov [#allocation5]  }
   0xb   : > { %s1458_s21 = scalar_select %p1140_p4, 1, 0 }
   0xc   : > { %s1459_s22 = scalar_select %p1145_p6, 1, 0 }
   0xd   : > { %p1150_p8 = pnand %p795_p5, %p141_p7  ;;  %s153_s25 = sshll.u32 %s1069_s24, 4  ;;  %s1154_s25 = int_to_ptr.vmem [resolvable:$true] %s153_s25 }
   0xe   : > { %s1166_s27 = sadd.s32 1, %s1067_s18   ;;  %s28_s28 = sadd.s32 1, %s1063_s17 }
   0xf   : > { %s1460_s23 = scalar_select %p1150_p8, 1, 0 }
  0x10   : > { %p849_p9 = pneg %p1150_p8  ;;  %s25_s29 = ssub.s32 %s1067_s18, %s1166_s27 }
  0x11   : > { %s939_s6 = scalar_lea.hbm %s1451_s1, 1728 }
  0x12   : > { %p1161_p11 = pnand %p849_p9, %p1455_p1  ;;  %p940_p12 = scmp.ne.s32.totalorder %s1451_s1, %s939_s6 }
  0x13   : > { %p946_p5 = scmp.lt.u32.totalorder %s939_s6, %s1451_s1 }
  0x14   : > { %p941_p13 = pneg %p1161_p11 }
  0x16   : > { %p942_p0 = pnand %p941_p13, %p940_p12 }
  0x18   : > { %p943_p3 = pneg %p942_p0 }
  0x1a   : > { %p948_p7 = pnand %p946_p5, %p943_p3 }
  0x1c   : > { %951 = shalt.err (!%p948_p7)
}
  0x1d   : > { %s952_s11 = scalar_lea.vmem %s1154_s25, 1728  ;;  %p960_p2 = scmp.lt.s32.totalorder %s1154_s25, %s1154_s25 }
  0x1e   : > { %p953_p9 = scmp.ne.s32.totalorder %s1154_s25, %s952_s11  ;;  %p961_p6 = scmp.lt.s32.totalorder %s952_s11, %s952_s11 }
  0x20   : > { %p955_p10 = pnand %p953_p9, %p941_p13  ;;  %p962_p4 = por %p961_p6, %p960_p2 }
  0x22   : > { %p956_p1 = pneg %p955_p10 }
  0x24   : > { %p963_p8 = pnand %p962_p4, %p956_p1 }
  0x26   : > { %966 = shalt.err (!%p963_p8)
}
  0x27   : > { %s1070_s12 = smov 192   ;;  %s1071_s13 = smov 12  }
  0x28   : > { %852 = dma.hbm_to_vmem [thread:$0]  (!%p1161_p11), %s1451_s1, 1728, %s1154_s25, [#allocation6], %s1070_s12, %s1070_s12, %s1071_s13  }
  0x29   : > { %p26_p2 = scmp.eq.s32.totalorder %s25_s29, 0  ;;  %p35_p1 = scmp.ne.s32.totalorder %s1063_s17, %s1059_s16 }
  0x2a   : > { %p36_p4 = scmp.eq.s32.totalorder %s1067_s18, 0  ;;  %p862_p6 = scmp.lt.s32.totalorder %s1067_s18, 2 }
  0x2b   : > { %s1197_s24 = scalar_select %p26_p2, %s1063_s17, %s28_s28  }
  0x2c   : > { %p37_p8 = por %p36_p4, %p35_p1  ;;  %p1462_p10 = scmp.eq.s32.totalorder %s1131_s19, 1 }
  0x2d   : > { %s173_s5 = sand.u32 1, %s1063_s17   ;;  %s834_s6 = sshll.u32 %s1067_s18, 8 }
  0x2e   : > { %p1201_p12 = por %p1462_p10, %p35_p1  ;;  %s798_s7 = sshll.u32 %s173_s5, 4 }
  0x2f   : > { %s1210_s9 = scalar_lea.hbm %s1450_s0, %s834_s6  ;;  %s177_s25 = scalar_lea.vmem [#allocation2], %s798_s7 }
  0x30   : > { %s185_s28 = sshll.u32 %s177_s25, 4  ;;  %p1212_p11 = pnand %p862_p6, %p37_p8  ;;  %s1216_s28 = int_to_ptr.vmem [resolvable:$true] %s185_s28 }
  0x31   : > { %s174_s10 = scalar_lea.sflag [#allocation3], %s173_s5  ;;  %s967_s11 = scalar_lea.hbm %s1210_s9, 256 }
  0x32   : > { %p968_p13 = scmp.ne.s32.totalorder %s1210_s9, %s967_s11  ;;  %p969_p0 = pneg %p1212_p11 }
  0x33   : > { %s972_s14 = scalar_lea.hbm %s1450_s0, 512  ;;  %p973_p7 = scmp.lt.u32.totalorder %s1210_s9, %s1450_s0 }
  0x34   : > { %p970_p3 = pnand %p969_p0, %p968_p13  ;;  %p974_p9 = scmp.lt.u32.totalorder %s972_s14, %s967_s11 }
  0x35   : > { %p976_p1 = scmp.lt.u32.totalorder %s967_s11, %s1210_s9 }
  0x36   : > { %p971_p5 = pneg %p970_p3  ;;  %p975_p2 = por %p974_p9, %p973_p7 }
  0x38   : > { %p977_p4 = por %p976_p1, %p975_p2 }
  0x3a   : > { %p978_p6 = pnand %p977_p4, %p971_p5 }
  0x3c   : > { %981 = shalt.err (!%p978_p6)
}
  0x3d   : > { %s982_s5 = scalar_lea.vmem %s1216_s28, 256  ;;  %s1072_s7 = smov [#allocation2]  }
  0x3e   : > { %p983_p8 = scmp.ne.s32.totalorder %s1216_s28, %s982_s5  ;;  %s987_s26 = sshll.u32 %s1072_s7, 4  ;;  %s988_s26 = int_to_ptr.vmem [resolvable:$false] %s987_s26 }
  0x3f   : > { %s989_s8 = scalar_lea.vmem %s988_s26, 512  ;;  %p990_p3 = scmp.lt.s32.totalorder %s1216_s28, %s988_s26 }
  0x40   : > { %p985_p10 = pnand %p983_p8, %p969_p0  ;;  %p991_p7 = scmp.lt.s32.totalorder %s989_s8, %s982_s5 }
  0x42   : > { %p986_p13 = pneg %p985_p10  ;;  %p992_p9 = por %p991_p7, %p990_p3 }
  0x44   : > { %p993_p2 = pnand %p992_p9, %p986_p13 }
  0x46   : > { %996 = shalt.err (!%p993_p2)
}
  0x47   : > { %856 = dma.hbm_to_vmem [thread:$0]  (!%p1212_p11), %s1210_s9, 256, %s1216_s28, %s174_s10  }
  0x48   : > { %p1465_p5 = scmp.ne.s32.totalorder %s1460_s23, 0 }
  0x49   : > { %s1246_s25 = sand.u32 (!%p1465_p5), 1, %s1059_s16   ;;  %p1466_p0 = scmp.ne.s32.totalorder (!%p1465_p5), %s1458_s21, 0 }
  0x4a   : > { %194 = sbr.rel (%p1465_p5) target bundleno = 520 (0x208), region = 36  ;;  %s802_s11 = sshll.u32 (!%p1465_p5), %s1246_s25, 4 }
  0x4b   : > { %s197_s12 = scalar_lea.sflag (!%p1465_p5), [#allocation3], %s1246_s25  ;;  %s200_s13 = scalar_lea.vmem (!%p1465_p5), [#allocation2], %s802_s11 }
  0x51   : > { %1042 = dma.done.wait (%p1466_p0), %s197_s12, 256  }
  0x52   : > { %1044 = vsyncadd (%p1466_p0), %s197_s12, 4294967040  ;;  %p1467_p1 = scmp.eq.s32.totalorder %s1131_s19, 0 }
  0x54   : > { %1046 = dma.done.wait (%p1467_p1), [#allocation6], 1728   ;;  %p1468_p11 = pmov %p1467_p1 }
  0x55   : > { %v1073_v0 = vmov 0   ;;  %v252_v1 = vld [vmem:[%s200_s13] sm:$0xff]  ;;  %v253_v2 = vld [vmem:[%s200_s13 + $0x8] sm:$0xff]  ;;  %s1074_s21 = smov 127   ;;  %s1075_s23 = smov 126   ;;  %vm585_vm0 = vcmask 130048  }
  0x56   : > { %1048 = vsyncadd (%p1468_p11), [#allocation6], 4294965568  ;;  %632 = vmatprep.subr.bf16.mxu1 %v1073_v0  ;;  %911 = vset.pattern.permute.xlu0 %v1073_v0  ;;  %v1261_v3 = vcombine.high %v252_v1, %v252_v1  ;;  %v1263_v4 = vcombine.low %v252_v1, %v252_v1  ;;  %v806_v5 = vcombine.low %v253_v2, %v253_v2  ;;  %s1076_s9 = smov 110   ;;  %s1077_s28 = smov 109   ;;  %v938_v7 = vld [vmem:[%s1452_s2 + $0x4] ss:$8 sps:$4 sm:$0xff]  }
  0x57   : > { %912 = vset.pattern.permute.xlu1 %v1073_v0  ;;  %v807_v6 = vcombine.high %v253_v2, %v253_v2  ;;  %s1078_s29 = smov 108   ;;  %s1079_s10 = smov 92   ;;  %825 = vmatprep.mubr.msk.bf16.mxu0 %vm585_vm0, %v938_v7  ;;  %v250_v8 = vld [vmem:[%s1453_s3] sm:$0xff]  ;;  %v251_v9 = vld [vmem:[%s1453_s3 + $0x8] sm:$0xff]  ;;  %vm272_vm1 = vcmask 1039360   ;;  %vm363_vm2 = vcmask 1043456  }
  0x58   : > { %266 = vrot.lane.b32.xlu0 %v1261_v3, %s1074_s21  ;;  %264 = vrot.lane.b32.xlu1 %v1263_v4, %s1074_s21  ;;  %s1080_s14 = smov 91   ;;  %s1081_s20 = smov 90   ;;  %v917_v13 = vld [vmem:[#allocation5 + $0x4] ss:$12 sps:$4 sm:$0xff]   ;;  %v919_v14 = vld [vmem:[#allocation5 + $0x8] ss:$12 sps:$4 sm:$0xff]  }
  0x59   : > { %826 = vmatprep.mubr.msk.bf16.mxu1 %vm585_vm0, %v938_v7  ;;  %v920_v17 = vld [vmem:[#allocation5] ss:$12 sps:$4 sm:$0xff]   ;;  %vm284_vm3 = vcmask 1031168   ;;  %vm296_vm4 = vcmask 900096   ;;  %v921_v28 = vld [vmem:[#allocation5 + $0x1c] ss:$12 sps:$4 sm:$0xff]  }
  0x5a   : > { %v923_v35 = vld [vmem:[#allocation5 + $0x18] ss:$12 sps:$4 sm:$0xff]   ;;  %v924_v42 = vld [vmem:[#allocation5 + $0x20] ss:$12 sps:$4 sm:$0xff]   ;;  %vm308_vm5 = vcmask 891904   ;;  %vm320_vm6 = vcmask 883712  }
  0x5b   : > { %v925_v51 = vld [vmem:[#allocation5 + $0x34] ss:$12 sps:$4 sm:$0xff]   ;;  %v927_v58 = vld [vmem:[#allocation5 + $0x30] ss:$12 sps:$4 sm:$0xff]   ;;  %v928_v2 = vld [vmem:[#allocation5 + $0x38] ss:$12 sps:$4 sm:$0xff]  }
  0x5c   : > { %268 = vrot.lane.b32.xlu0 %v806_v5, %s1074_s21  ;;  %270 = vrot.lane.b32.xlu1 %v807_v6, %s1074_s21  ;;  %vm332_vm7 = vcmask 752640   ;;  %vm344_vm8 = vcmask 744448   ;;  %vm356_vm9 = vcmask 736256   ;;  %s839_s21 = smul.u32 24, %s1246_s25  ;;  %s1082_s6 = smov [#allocation7]  }
  0x5d   : > { %s1001_s5 = sshll.u32 %s1082_s6, 4  ;;  %s1002_s5 = int_to_ptr.vmem [resolvable:$false] %s1001_s5 }
  0x5e   : > { %s1003_s7 = scalar_lea.vmem %s1002_s5, 768 }
  0x60   : > { %278 = vrot.lane.b32.xlu0 %v1261_v3, %s1075_s23  ;;  %280 = vrot.lane.b32.xlu1 %v806_v5, %s1075_s23 }
  0x64   : > { %290 = vrot.lane.b32.xlu0 %v1261_v3, %s1076_s9  ;;  %292 = vrot.lane.b32.xlu1 %v806_v5, %s1076_s9 }
  0x68   : > { %276 = vrot.lane.b32.xlu0 %v1263_v4, %s1075_s23  ;;  %288 = vrot.lane.b32.xlu1 %v1263_v4, %s1076_s9 }
  0x6c   : > { %282 = vrot.lane.b32.xlu0 %v807_v6, %s1075_s23  ;;  %294 = vrot.lane.b32.xlu1 %v807_v6, %s1076_s9  ;;  %s228_s23 = scalar_lea.vmem [#allocation7], %s839_s21 }
  0x6d   : > { %s711_s9 = sshll.u32 %s228_s23, 4  ;;  %s1401_s9 = int_to_ptr.vmem [resolvable:$true] %s711_s9 }
  0x6e   : > { %p1004_p10 = scmp.lt.s32.totalorder %s1401_s9, %s1002_s5 }
  0x70   : > { %302 = vrot.lane.b32.xlu0 %v1261_v3, %s1077_s28  ;;  %304 = vrot.lane.b32.xlu1 %v806_v5, %s1077_s28 }
  0x74   : > { %314 = vrot.lane.b32.xlu0 %v1261_v3, %s1078_s29  ;;  %316 = vrot.lane.b32.xlu1 %v806_v5, %s1078_s29 }
  0x78   : > { %300 = vrot.lane.b32.xlu0 %v1263_v4, %s1077_s28  ;;  %312 = vrot.lane.b32.xlu1 %v1263_v4, %s1078_s29 }
  0x7c   : > { %306 = vrot.lane.b32.xlu0 %v807_v6, %s1077_s28  ;;  %318 = vrot.lane.b32.xlu1 %v807_v6, %s1078_s29  ;;  %s840_s28 = smul.u32 384, %s1131_s19 }
  0x80   : > { %326 = vrot.lane.b32.xlu0 %v1261_v3, %s1079_s10  ;;  %328 = vrot.lane.b32.xlu1 %v806_v5, %s1079_s10 }
  0x84   : > { %338 = vrot.lane.b32.xlu0 %v1261_v3, %s1080_s14  ;;  %340 = vrot.lane.b32.xlu1 %v806_v5, %s1080_s14 }
  0x88   : > { %324 = vrot.lane.b32.xlu0 %v1263_v4, %s1079_s10  ;;  %336 = vrot.lane.b32.xlu1 %v1263_v4, %s1080_s14 }
  0x8c   : > { %330 = vrot.lane.b32.xlu0 %v807_v6, %s1079_s10  ;;  %342 = vrot.lane.b32.xlu1 %v807_v6, %s1080_s14  ;;  %s1406_s10 = scalar_lea.hbm %s1454_s4, %s840_s28  ;;  %s698_s14 = scalar_lea.sflag [#allocation4], %s1246_s25 }
  0x90   : > { %350 = vrot.lane.b32.xlu0 %v1261_v3, %s1081_s20  ;;  %352 = vrot.lane.b32.xlu1 %v806_v5, %s1081_s20 }
  0x94   : > { %348 = vrot.lane.b32.xlu0 %v1263_v4, %s1081_s20  ;;  %354 = vrot.lane.b32.xlu1 %v807_v6, %s1081_s20  ;;  %s997_s20 = scalar_lea.vmem %s1401_s9, 384 }
  0x95   : > { %p998_p4 = scmp.ne.s32.totalorder %s1401_s9, %s997_s20  ;;  %p1005_p13 = scmp.lt.s32.totalorder %s1003_s7, %s997_s20 }
  0x97   : > { %p999_p6 = pnand %p998_p4, %p1201_p12  ;;  %p1006_p3 = por %p1005_p13, %p1004_p10 }
  0x98   : > { %568 = vperm.xlu0 %911, %v250_v8   ;;  %573 = vperm.xlu1 %912, %v251_v9  }
  0x99   : > { %p1000_p8 = pneg %p999_p6 }
  0x9b   : > { %p1007_p7 = pnand %p1006_p3, %p1000_p8 }
  0xca   : > { %v267_v10 = vpop.permute.xlu0 %266  ;;  %v265_v11 = vpop.permute.xlu1 %264 }
  0xcb   : > { %v273_v12 = vsel %vm272_vm1, %v265_v11, %v267_v10  ;;  %v929_v11 = vld [vmem:[#allocation5 + $0x4c] ss:$12 sps:$4 sm:$0xff]  }
  0xcc   : > { %v1292_v20 = vsel %vm363_vm2, %v1263_v4, %v273_v12 }
  0xcd   : > { %v487_v27 = vmul.bf16 %v920_v17, %v1292_v20 }
  0xce   : > { %v269_v15 = vpop.permute.xlu0 %268  ;;  %v271_v16 = vpop.permute.xlu1 %270 }
  0xcf   : > { %v274_v18 = vsel %vm272_vm1, %v267_v10, %v269_v15  ;;  %v275_v19 = vsel %vm272_vm1, %v269_v15, %v271_v16 }
  0xd0   : > { %v1296_v21 = vsel %vm363_vm2, %v1261_v3, %v274_v18  ;;  %v1299_v22 = vsel %vm363_vm2, %v806_v5, %v275_v19  ;;  %v931_v18 = vld [vmem:[#allocation5 + $0x48] ss:$12 sps:$4 sm:$0xff]  }
  0xd1   : > { %v488_v23 = vmul.bf16 %v917_v13, %v1296_v21  ;;  %v489_v24 = vmul.bf16 %v919_v14, %v1299_v22 }
  0xd2   : > { %v279_v25 = vpop.permute.xlu0 %278  ;;  %v281_v26 = vpop.permute.xlu1 %280 }
  0xd3   : > { %589 = vmatprep.subr.bf16.mxu0 %v488_v23  ;;  %633 = vmatpush1.bf16.msra.mxu1 %v489_v24  ;;  %v286_v31 = vsel %vm284_vm3, %v279_v25, %v281_v26 }
  0xd4   : > { %590 = vmatpush1.bf16.msra.mxu0 %v487_v27  ;;  %634 = vmatprep.subr.bf16.mxu1 %v1073_v0 }
  0xd6   : > { %v291_v29 = vpop.permute.xlu0 %290  ;;  %v293_v30 = vpop.permute.xlu1 %292 }
  0xd7   : > { %v298_v32 = vsel %vm296_vm4, %v291_v29, %v293_v30 }
  0xd8   : > { %v1308_v33 = vsel %vm363_vm2, %v286_v31, %v298_v32 }
  0xd9   : > { %v491_v34 = vmul.bf16 %v921_v28, %v1308_v33  ;;  %v246_v28 = vld [vmem:[#allocation5 + $0x60] sm:$0xff] }
  0xda   : > { %v277_v36 = vpop.permute.xlu0 %276  ;;  %v289_v37 = vpop.permute.xlu1 %288 }
  0xdb   : > { %v285_v38 = vsel %vm284_vm3, %v277_v36, %v279_v25  ;;  %v297_v39 = vsel %vm296_vm4, %v289_v37, %v291_v29  ;;  %591 = vmatprep.subr.bf16.mxu0 %v491_v34  ;;  %v933_v29 = vld [vmem:[#allocation5 + $0x50] ss:$12 sps:$4 sm:$0xff]   ;;  %v821_v36 = vcombine.high %v246_v28, %v246_v28 }
  0xdc   : > { %v1314_v40 = vsel %vm363_vm2, %v285_v38, %v297_v39 }
  0xdd   : > { %v490_v41 = vmul.bf16 %v923_v35, %v1314_v40 }
  0xde   : > { %v283_v43 = vpop.permute.xlu0 %282  ;;  %v295_v44 = vpop.permute.xlu1 %294 }
  0xdf   : > { %v287_v45 = vsel %vm284_vm3, %v281_v26, %v283_v43  ;;  %v299_v46 = vsel %vm296_vm4, %v293_v30, %v295_v44  ;;  %592 = vmatpush1.bf16.msra.mxu0 %v490_v41  ;;  %v820_v44 = vcombine.low %v246_v28, %v246_v28 }
  0xe0   : > { %v1320_v47 = vsel %vm363_vm2, %v287_v45, %v299_v46  ;;  %v935_v45 = vld [vmem:[#allocation5 + $0x68] ss:$0 sps:$4 sm:$0xff]  }
  0xe1   : > { %v492_v48 = vmul.bf16 %v924_v42, %v1320_v47  ;;  %v516_v42 = vrot.slane %v1296_v21, 4  ;;  %v515_v21 = vrot.slane %v1292_v20, 4 }
  0xe2   : > { %v303_v49 = vpop.permute.xlu0 %302  ;;  %v305_v50 = vpop.permute.xlu1 %304 }
  0xe3   : > { %635 = vmatpush1.bf16.msra.mxu1 %v492_v48  ;;  %v310_v54 = vsel %vm308_vm5, %v303_v49, %v305_v50 }
  0xe4   : > { %636 = vmatprep.subr.bf16.mxu1 %v1073_v0 }
  0xe6   : > { %v315_v52 = vpop.permute.xlu0 %314  ;;  %v317_v53 = vpop.permute.xlu1 %316 }
  0xe7   : > { %v322_v55 = vsel %vm320_vm6, %v315_v52, %v317_v53 }
  0xe8   : > { %v1327_v56 = vsel %vm363_vm2, %v310_v54, %v322_v55 }
  0xe9   : > { %v494_v57 = vmul.bf16 %v925_v51, %v1327_v56 }
  0xea   : > { %v301_v59 = vpop.permute.xlu0 %300  ;;  %v313_v60 = vpop.permute.xlu1 %312 }
  0xeb   : > { %v309_v61 = vsel %vm308_vm5, %v301_v59, %v303_v49  ;;  %v321_v62 = vsel %vm320_vm6, %v313_v60, %v315_v52  ;;  %593 = vmatprep.subr.bf16.mxu0 %v494_v57  ;;  %v518_v57 = vrot.slane %v1314_v40, 4 }
  0xec   : > { %v1333_v63 = vsel %vm363_vm2, %v309_v61, %v321_v62 }
  0xed   : > { %v493_v1 = vmul.bf16 %v927_v58, %v1333_v63  ;;  %v522_v58 = vrot.slane %v1320_v47, 4  ;;  %v524_v20 = vrot.slane %v1333_v63, 4  ;;  %v519_v40 = vsel %vm363_vm2, %v515_v21, %v518_v57 }
  0xee   : > { %v307_v3 = vpop.permute.xlu0 %306  ;;  %v319_v4 = vpop.permute.xlu1 %318 }
  0xef   : > { %v311_v5 = vsel %vm308_vm5, %v305_v50, %v307_v3  ;;  %v323_v6 = vsel %vm320_vm6, %v317_v53, %v319_v4  ;;  %594 = vmatpush1.bf16.msra.mxu0 %v493_v1  ;;  %v520_v50 = vrot.slane %v1308_v33, 4  ;;  %v517_v53 = vrot.slane %v1299_v22, 4 }
  0xf0   : > { %v1339_v7 = vsel %vm363_vm2, %v311_v5, %v323_v6  ;;  %v526_v33 = vrot.slane %v1327_v56, 4  ;;  %v525_v63 = vsel %vm363_vm2, %v518_v57, %v524_v20 }
  0xf1   : > { %v495_v8 = vmul.bf16 %v928_v2, %v1339_v7  ;;  %v521_v61 = vsel %vm363_vm2, %v516_v42, %v520_v50  ;;  %v528_v22 = vrot.slane %v1339_v7, 4  ;;  %v523_v47 = vsel %vm363_vm2, %v517_v53, %v522_v58 }
  0xf2   : > { %v327_v9 = vpop.permute.xlu0 %326  ;;  %v329_v10 = vpop.permute.xlu1 %328  ;;  %v527_v56 = vsel %vm363_vm2, %v520_v50, %v526_v33 }
  0xf3   : > { %637 = vmatpush1.bf16.msra.mxu1 %v495_v8  ;;  %v334_v14 = vsel %vm332_vm7, %v327_v9, %v329_v10  ;;  %v529_v3 = vsel %vm363_vm2, %v522_v58, %v528_v22 }
  0xf4   : > { %638 = vmatprep.subr.bf16.mxu1 %v1073_v0 }
  0xf6   : > { %v339_v12 = vpop.permute.xlu0 %338  ;;  %v341_v13 = vpop.permute.xlu1 %340 }
  0xf7   : > { %v346_v15 = vsel %vm344_vm8, %v339_v12, %v341_v13 }
  0xf8   : > { %v1346_v16 = vsel %vm363_vm2, %v334_v14, %v346_v15 }
  0xf9   : > { %v497_v17 = vmul.bf16 %v929_v11, %v1346_v16  ;;  %v532_v62 = vrot.slane %v1346_v16, 4 }
  0xfa   : > { %v325_v19 = vpop.permute.xlu0 %324  ;;  %v337_v23 = vpop.permute.xlu1 %336 }
  0xfb   : > { %v333_v24 = vsel %vm332_vm7, %v325_v19, %v327_v9  ;;  %v345_v25 = vsel %vm344_vm8, %v337_v23, %v339_v12  ;;  %595 = vmatprep.subr.bf16.mxu0 %v497_v17  ;;  %v533_v5 = vsel %vm363_vm2, %v526_v33, %v532_v62 }
  0xfc   : > { %v1352_v26 = vsel %vm363_vm2, %v333_v24, %v345_v25 }
  0xfd   : > { %v496_v27 = vmul.bf16 %v931_v18, %v1352_v26  ;;  %v530_v1 = vrot.slane %v1352_v26, 4 }
  0xfe   : > { %v331_v30 = vpop.permute.xlu0 %330  ;;  %v343_v31 = vpop.permute.xlu1 %342 }
  0xff   : > { %v335_v32 = vsel %vm332_vm7, %v329_v10, %v331_v30  ;;  %v347_v34 = vsel %vm344_vm8, %v341_v13, %v343_v31  ;;  %596 = vmatpush1.bf16.msra.mxu0 %v496_v27  ;;  %v531_v8 = vsel %vm363_vm2, %v524_v20, %v530_v1  ;;  %v936_v13 = vld [vmem:[%s1452_s2] ss:$8 sps:$4 sm:$0xff]  }
 0x100   : > { %v1358_v35 = vsel %vm363_vm2, %v335_v32, %v347_v34 }
 0x101   : > { %v498_v37 = vmul.bf16 %v933_v29, %v1358_v35  ;;  %v534_v2 = vrot.slane %v1358_v35, 4 }
 0x102   : > { %v351_v38 = vpop.permute.xlu0 %350  ;;  %v353_v39 = vpop.permute.xlu1 %352 }
 0x103   : > { %v358_v41 = vsel %vm356_vm9, %v351_v38, %v353_v39  ;;  %639 = vmatpush1.bf16.msra.mxu1 %v498_v37  ;;  %v535_v9 = vsel %vm363_vm2, %v528_v22, %v534_v2 }
 0x104   : > { %v500_v43 = vmul.bf16 %v821_v36, %v358_v41  ;;  %640 = vmatprep.subr.bf16.mxu1 %v1073_v0  ;;  %v538_v4 = vrot.slane %v358_v41, 4 }
 0x106   : > { %v349_v46 = vpop.permute.xlu0 %348  ;;  %v355_v48 = vpop.permute.xlu1 %354  ;;  %v560_v49 = vsel %vm363_vm2, %v500_v43, %v516_v42  ;;  %v539_v10 = vsel %vm363_vm2, %v532_v62, %v538_v4 }
 0x107   : > { %v357_v51 = vsel %vm356_vm9, %v349_v46, %v351_v38  ;;  %v359_v52 = vsel %vm356_vm9, %v353_v39, %v355_v48  ;;  %597 = vmatprep.subr.bf16.mxu0 %v560_v49 }
 0x108   : > { %v499_v54 = vmul.bf16 %v820_v44, %v357_v51  ;;  %v501_v55 = vmul.bf16 %v935_v45, %v359_v52  ;;  %v536_v6 = vrot.slane %v357_v51, 4  ;;  %v540_v7 = vrot.slane %v359_v52, 4 }
 0x10a   : > { %v556_v59 = vsel %vm363_vm2, %v499_v54, %v515_v21  ;;  %v564_v60 = vsel %vm363_vm2, %v501_v55, %v517_v53  ;;  %v537_v11 = vsel %vm363_vm2, %v530_v1, %v536_v6  ;;  %v541_v12 = vsel %vm363_vm2, %v534_v2, %v540_v7 }
 0x10b   : > { %598 = vmatpush1.bf16.msra.mxu0 %v556_v59  ;;  %641 = vmatpush1.bf16.msra.mxu1 %v564_v60 }
 0x10c   : > { %599 = vmatprep.subr.bf16.mxu0 %v521_v61  ;;  %642 = vmatprep.subr.bf16.mxu1 %v1073_v0 }
 0x10f   : > { %600 = vmatpush1.bf16.msra.mxu0 %v519_v40  ;;  %643 = vmatpush1.bf16.msra.mxu1 %v523_v47 }
 0x110   : > { %601 = vmatprep.subr.bf16.mxu0 %v527_v56  ;;  %644 = vmatprep.subr.bf16.mxu1 %v1073_v0 }
 0x113   : > { %602 = vmatpush1.bf16.msra.mxu0 %v525_v63  ;;  %645 = vmatpush1.bf16.msra.mxu1 %v529_v3 }
 0x114   : > { %603 = vmatprep.subr.bf16.mxu0 %v533_v5  ;;  %646 = vmatprep.subr.bf16.mxu1 %v1073_v0 }
 0x117   : > { %604 = vmatpush1.bf16.msra.mxu0 %v531_v8  ;;  %647 = vmatpush1.bf16.msra.mxu1 %v535_v9  ;;  %v569_v14 = vpop.permute.xlu0 %568  ;;  %v574_v15 = vpop.permute.xlu1 %573 }
 0x118   : > { %605 = vmatprep.subr.bf16.mxu0 %v539_v10  ;;  %648 = vmatprep.subr.bf16.mxu1 %v1073_v0 }
 0x11b   : > { %606 = vmatpush1.bf16.msra.mxu0 %v537_v11  ;;  %649 = vmatpush1.bf16.msra.mxu1 %v541_v12 }
 0x11e   : > { %622 = vmatmul.mubr.bf16.vlgmr.msra.gmra.mrb[0].mxu0 %v936_v13  ;;  %665 = vmatmul.mubr.bf16.vlgmr.msra.gmra.mrb[0].mxu1 %v936_v13 }
 0x1f1   : > { %v623_v16 = vpop.f32.mrb[0].mxu0  ;;  %v666_v17 = vpop.f32.mrb[0].mxu1 }
 0x1f2   : > { %v624_v18 = vadd.f32 %v623_v16, %v569_v14  ;;  %v667_v0 = vadd.f32 %v666_v17, %v569_v14  ;;  %v625_v19 = vpop.f32.mrb[1].mxu0  ;;  %v668_v23 = vpop.f32.mrb[1].mxu1 }
 0x1f3   : > { %v626_v24 = vadd.f32 %v625_v19, %v569_v14  ;;  %v627_v25 = vpop.f32.mrb[2].mxu0  ;;  %v669_v26 = vpop.f32.mrb[2].mxu1 }
 0x1f4   : > { %v836_v27 = vpack.c.bf16 %v667_v0, %v667_v0  ;;  %v628_v28 = vadd.f32 %v627_v25, %v574_v15  ;;  %v670_v29 = vadd.f32 %v669_v26, %v574_v15  ;;  %v629_v30 = vpop.f32.mrb[3].mxu0  ;;  %v671_v31 = vpop.f32.mrb[3].mxu1 }
 0x1f5   : > { %v835_v32 = vpack.c.bf16 %v626_v24, %v624_v18  ;;  %v630_v34 = vadd.f32 %v629_v30, %v574_v15 }
 0x1f6   : > { %694 = vst [vmem:[%s228_s23 + $0x8] sm:$0xf] %v836_v27  ;;  %v838_v35 = vpack.c.bf16 %v670_v29, %v670_v29 }
 0x1f7   : > { %693 = vst [vmem:[%s228_s23] sm:$0xff] %v835_v32  ;;  %v837_v36 = vpack.c.bf16 %v630_v34, %v628_v28 }
 0x1f8   : > { %696 = vst [vmem:[%s228_s23 + $0x14] sm:$0xf] %v838_v35 }
 0x1f9   : > { %695 = vst [vmem:[%s228_s23 + $0xc] sm:$0xff] %v837_v36 }
 0x1fa   : > { %1010 = shalt.err (!%p1007_p7)
}
 0x1fb   : > { %s1011_s26 = scalar_lea.hbm %s1406_s10, 384  ;;  %s1015_s12 = scalar_lea.hbm %s1454_s4, 768 }
 0x1fc   : > { %p1012_p9 = scmp.ne.s32.totalorder %s1406_s10, %s1011_s26  ;;  %p1016_p0 = scmp.lt.u32.totalorder %s1406_s10, %s1454_s4 }
 0x1fd   : > { %p1017_p1 = scmp.lt.u32.totalorder %s1015_s12, %s1011_s26  ;;  %p1019_p4 = scmp.lt.u32.totalorder %s1011_s26, %s1406_s10 }
 0x1fe   : > { %p1013_p2 = pnand %p1012_p9, %p1201_p12 }
 0x1ff   : > { %p1018_p11 = por %p1017_p1, %p1016_p0 }
 0x200   : > { %p1014_p5 = pneg %p1013_p2 }
 0x201   : > { %p1020_p6 = por %p1019_p4, %p1018_p11 }
 0x203   : > { %p1021_p8 = pnand %p1020_p6, %p1014_p5 }
 0x205   : > { %1024 = shalt.err (!%p1021_p8)
}
 0x206   : > { %s1083_s23 = smov 192   ;;  %s1084_s28 = smov 12  }
 0x207   : > { %847 = dma.vmem_to_hbm [thread:$0]  (%p1201_p12), %s1401_s9, 384, %s1406_s10, %s698_s14, %s1083_s23, %s1083_s23, %s1084_s28  }
 0x208 PF: > { %s726_s19 = sand.u32 1, %s1055_s15   ;;  %p1469_p10 = scmp.ne.s32.totalorder %s1459_s22, 0 }
 0x209   : > { %p1470_p13 = scmp.ge.s32.totalorder %s1067_s18, 2  ;;  %s727_s29 = scalar_lea.sflag [#allocation4], %s726_s19 }
 0x20b   : > { %p858_p3 = pnand %p1470_p13, %p1469_p10 }
 0x20d   : > { %1050 = dma.done.wait (!%p858_p3), %s727_s29, 384  }
 0x20e   : > { %1052 = vsyncadd (!%p858_p3), %s727_s29, 4294966912  ;;  %p18_p7 = scmp.ge.s32.totalorder %s1166_s27, 4   ;;  %s1471_s15 = smov %s1059_s16 }
 0x20f   : > { %s1472_s16 = smov %s1063_s17  ;;  %s1473_s17 = smov %s1197_s24 }
 0x210   : > { %s1474_s18 = smov %s1166_s27  ;;  %20 = sbr.rel (!%p18_p7) target bundleno = 6 (0x6), region = 85 }
 0x217   :  { %732 = vsyncpa [#allocation3], 1 }
 0x218   :  { %734 = vsyncpa [#allocation3 + $0x1], 1 }
 0x219   :  { %735 = vsyncpa [#allocation6], 1 }
 0x21a   :  { %736 = vsyncpa [#allocation4], 1 }
 0x21b   :  { %738 = vsyncpa [#allocation4 + $0x1], 1 }

</bundles_post_ra>
